<compile_context>
chip_gen: v5e
topology: v5e:2x2
jax: 0.10.0
libtpu: 0.0.40
codegen_flags: <defaults>
</compile_context>

<pallas_src>
import jax
import jax.numpy as jnp
from jax.experimental import pallas as pl
from jax.experimental.pallas import tpu as pltpu

LEAKY_SLOPE = 0.01  # PyTorch nn.LeakyReLU default


def _proposal_head_kernel(x_ref, w1_ref, b1_ref, w2_ref, b2_ref, o_ref):
    """One batch element per grid step (transposed layout: lanes = H*W).

    x_ref : (1, 9*Cin, HW)  bf16  im2col'ed, spatially padded features
    w1_ref: (Hid, 9*Cin)    bf16  3x3 conv weights flattened in (dy, dx, cin) order
    b1_ref: (Hid, 1)        f32
    w2_ref: (Cout, Hid)     bf16  1x1 conv weights (transposed)
    b2_ref: (Cout, 1)       f32
    o_ref : (1, Cout, HW)   f32   (channel-major -> matches NCHW after reshape)
    """
    x = x_ref[0]                                               # (9*Cin, HW) bf16

    # 3x3 conv (padding=1) as a single MXU matmul over the im2col'ed K=9*Cin axis.
    acc = jnp.dot(w1_ref[...], x, preferred_element_type=jnp.float32)  # (Hid, HW)
    acc = acc + b1_ref[...]                                    # lane-broadcast bias

    # Dropout (eval mode) = identity; LeakyReLU in f32 on the VPU.
    h = jnp.where(acc > 0, acc, LEAKY_SLOPE * acc)

    # 1x1 conv == matmul over channels; f32 accumulation.
    out = jnp.dot(w2_ref[...], h.astype(w2_ref.dtype),
                  preferred_element_type=jnp.float32)          # (Cout, HW)
    out = out + b2_ref[...]
    o_ref[0] = out.astype(o_ref.dtype)


def proposal_head_pallas(features_nchw, w1, b1, w2, b2):
    """Runs the pred_layer (conv3x3 -> dropout -> leakyrelu -> conv1x1).

    features_nchw: (B, Cin, H, W) float32  (PyTorch layout)
    w1: (3, 3, Cin, Hid), b1: (Hid,), w2: (Hid, A*6), b2: (A*6,)
    Returns pred with shape (B, A*6, H, W)  (PyTorch NCHW output layout).
    """
    B, Cin, H, W = features_nchw.shape
    Hid = w1.shape[-1]
    Cout = w2.shape[-1]
    HW = H * W

    # Zero-pad spatial dims by 1 (conv padding=1), staying in NCHW.
    x_pad = jnp.pad(features_nchw, ((0, 0), (0, 0), (1, 1), (1, 1)))

    # im2col -> (B, 9*Cin, H*W); shift-major (dy, dx), channel-minor ordering.
    cols = []
    for dy in range(3):
        for dx in range(3):
            xs = x_pad[:, :, dy:dy + H, dx:dx + W].reshape(B, Cin, HW)
            cols.append(xs)
    x_col = jnp.concatenate(cols, axis=1).astype(jnp.bfloat16)   # (B, 9*Cin, HW)

    # Weights transposed to match the im2col ordering / transposed compute.
    w1_t = jnp.transpose(w1, (3, 0, 1, 2)).reshape(Hid, 9 * Cin).astype(jnp.bfloat16)
    w2_t = jnp.transpose(w2, (1, 0)).astype(jnp.bfloat16)        # (Cout, Hid)
    b1_2d = b1.reshape(Hid, 1).astype(jnp.float32)
    b2_2d = b2.reshape(Cout, 1).astype(jnp.float32)

    out = pl.pallas_call(
        _proposal_head_kernel,
        out_shape=jax.ShapeDtypeStruct((B, Cout, HW), jnp.float32),
        grid_spec=pltpu.PrefetchScalarGridSpec(
            num_scalar_prefetch=0,
            grid=(B,),
            in_specs=[
                pl.BlockSpec((1, 9 * Cin, HW), lambda b: (b, 0, 0)),
                pl.BlockSpec((Hid, 9 * Cin), lambda b: (0, 0)),
                pl.BlockSpec((Hid, 1), lambda b: (0, 0)),
                pl.BlockSpec((Cout, Hid), lambda b: (0, 0)),
                pl.BlockSpec((Cout, 1), lambda b: (0, 0)),
            ],
            out_specs=pl.BlockSpec((1, Cout, HW), lambda b: (b, 0, 0)),
        ),
        compiler_params=pltpu.CompilerParams(
            dimension_semantics=("parallel",)),
    )(x_col, w1_t, b1_2d, w2_t, b2_2d)

    # (B, Cout, H*W) is already channel-major -> NCHW via a free reshape.
    return out.reshape(B, Cout, H, W)


# ----------------------------------------------------------------------------
# Plain-JAX glue reproducing ProposalModule.forward semantics.
# ----------------------------------------------------------------------------

def _extract_anchor_data(anchor_data, anchor_idx):
    """anchor_data: (B, A, D, H, W); anchor_idx: (M,) -> (M, D)."""
    B, A, D, H, W = anchor_data.shape
    flat = jnp.transpose(anchor_data, (0, 1, 3, 4, 2)).reshape(-1, D)
    return flat[anchor_idx]


def generate_proposal_fasterrcnn(anchors, offsets):
    # TODO(synk): GenerateProposal is external to the module; standard
    # FasterRCNN parameterization implemented here (plain JAX glue).
    x_tl, y_tl, x_br, y_br = anchors[:, 0], anchors[:, 1], anchors[:, 2], anchors[:, 3]
    wa = x_br - x_tl
    ha = y_br - y_tl
    xa = x_tl + wa * 0.5
    ya = y_tl + ha * 0.5
    tx, ty, tw, th = offsets[:, 0], offsets[:, 1], offsets[:, 2], offsets[:, 3]
    xc = xa + tx * wa
    yc = ya + ty * ha
    w = wa * jnp.exp(tw)
    h = ha * jnp.exp(th)
    return jnp.stack(
        [xc - w * 0.5, yc - h * 0.5, xc + w * 0.5, yc + h * 0.5], axis=1)


def proposal_module_forward(features, params, num_anchors,
                            pos_anchor_coord=None, pos_anchor_idx=None,
                            neg_anchor_idx=None):
    w1, b1, w2, b2 = params
    mode = 'eval' if (pos_anchor_coord is None or pos_anchor_idx is None
                      or neg_anchor_idx is None) else 'train'

    pred = proposal_head_pallas(features, w1, b1, w2, b2)  # (B, A*6, H, W)
    B, _, H, W = pred.shape
    pred = pred.reshape(B, num_anchors, 6, H, W)
    conf_scores = pred[:, :, :2, :, :]
    offsets = pred[:, :, 2:, :, :]

    if mode == 'eval':
        return conf_scores, offsets

    pos_scores = _extract_anchor_data(conf_scores, pos_anchor_idx)
    neg_scores = _extract_anchor_data(conf_scores, neg_anchor_idx)
    conf_scores = jnp.concatenate([pos_scores, neg_scores], axis=0)
    offsets = _extract_anchor_data(offsets, pos_anchor_idx)
    proposals = generate_proposal_fasterrcnn(pos_anchor_coord, offsets)
    return conf_scores, offsets, proposals


def init_params(key, in_dim, hidden_dim, num_anchors):
    """Deterministic synthetic weights (PyTorch-shaped, stored as HWIO/IO)."""
    k1, k2, k3, k4 = jax.random.split(key, 4)
    fan1 = in_dim * 3 * 3
    bound1 = 1.0 / (fan1 ** 0.5)
    w1 = jax.random.uniform(k1, (3, 3, in_dim, hidden_dim), jnp.float32,
                            -bound1, bound1)
    b1 = jax.random.uniform(k2, (hidden_dim,), jnp.float32, -bound1, bound1)
    fan2 = hidden_dim
    bound2 = 1.0 / (fan2 ** 0.5)
    w2 = jax.random.uniform(k3, (hidden_dim, num_anchors * 6), jnp.float32,
                            -bound2, bound2)
    b2 = jax.random.uniform(k4, (num_anchors * 6,), jnp.float32,
                            -bound2, bound2)
    return w1, b1, w2, b2


if __name__ == "__main__":
    key = jax.random.PRNGKey(0)
    B, in_dim, H, W = 2, 4, 16, 16
    hidden_dim, num_anchors = 32, 9
    M = 8

    kf, kp, kc, kn, kw = jax.random.split(key, 5)
    features = jax.random.normal(kf, (B, in_dim, H, W), jnp.float32)
    params = init_params(kw, in_dim, hidden_dim, num_anchors)

    # --- inference (eval) mode ---
    conf_eval, off_eval = proposal_module_forward(features, params, num_anchors)
    jax.block_until_ready((conf_eval, off_eval))
    assert conf_eval.shape == (B, num_anchors, 2, H, W)
    assert off_eval.shape == (B, num_anchors, 4, H, W)

    # --- training mode (anchor extraction + proposal generation) ---
    total = B * num_anchors * H * W
    pos_idx = jax.random.randint(kp, (M,), 0, total)
    neg_idx = jax.random.randint(kn, (M,), 0, total)
    xy_tl = jax.random.uniform(kc, (M, 2), jnp.float32, 0.0, 8.0)
    wh = jax.random.uniform(kc, (M, 2), jnp.float32, 1.0, 6.0)
    pos_coord = jnp.concatenate([xy_tl, xy_tl + wh], axis=1)

    conf_tr, off_tr, props = proposal_module_forward(
        features, params, num_anchors,
        pos_anchor_coord=pos_coord, pos_anchor_idx=pos_idx,
        neg_anchor_idx=neg_idx)
    jax.block_until_ready((conf_tr, off_tr, props))
    assert conf_tr.shape == (2 * M, 2)
    assert off_tr.shape == (M, 4)
    assert props.shape == (M, 4)

    print("KERNEL_OK")
</pallas_src>

<mosaic_0001>
module attributes {stable_mosaic.version = 11 : i64} {
  func.func @_proposal_head_kernel(%arg0: i32, %arg1: memref<1x36x256xbf16, #tpu.memory_space<vmem>>, %arg2: memref<32x36xbf16, #tpu.memory_space<vmem>>, %arg3: memref<32x1xf32, #tpu.memory_space<vmem>>, %arg4: memref<54x32xbf16, #tpu.memory_space<vmem>>, %arg5: memref<54x1xf32, #tpu.memory_space<vmem>>, %arg6: memref<1x54x256xf32, #tpu.memory_space<vmem>>) attributes {dimension_semantics = [#tpu.dimension_semantics<parallel>], iteration_bounds = array<i64: 2>, scalar_prefetch = 0 : i64, scratch_operands = 0 : i64, tpu.core_type = #tpu.core_type<tc>, window_params = [{transform_indices = @transform_0, window_bounds = array<i64: 1, 36, 256>}, {pipeline_mode = #tpu.pipeline_mode<synchronous>, transform_indices = @transform_1, window_bounds = array<i64: 32, 36>}, {pipeline_mode = #tpu.pipeline_mode<synchronous>, transform_indices = @transform_2, window_bounds = array<i64: 32, 1>}, {pipeline_mode = #tpu.pipeline_mode<synchronous>, transform_indices = @transform_3, window_bounds = array<i64: 54, 32>}, {pipeline_mode = #tpu.pipeline_mode<synchronous>, transform_indices = @transform_4, window_bounds = array<i64: 54, 1>}, {transform_indices = @transform_5, window_bounds = array<i64: 1, 54, 256>}]} {
    %c0 = arith.constant 0 : index
    %c0_0 = arith.constant 0 : index
    %c0_1 = arith.constant 0 : index
    %0 = vector.load %arg1[%c0, %c0_0, %c0_1] : memref<1x36x256xbf16, #tpu.memory_space<vmem>>, vector<1x36x256xbf16>
    %1 = vector.shape_cast %0 : vector<1x36x256xbf16> to vector<36x256xbf16>
    %c0_2 = arith.constant 0 : index
    %c0_3 = arith.constant 0 : index
    %2 = vector.load %arg2[%c0_2, %c0_3] : memref<32x36xbf16, #tpu.memory_space<vmem>>, vector<32x36xbf16>
    %cst = arith.constant dense<0.000000e+00> : vector<32x256xf32>
    %3 = tpu.matmul %2, %1, %cst {dimension_numbers = #tpu.dot_dimension_numbers<[1], [0], [0], [1], [0, 0, 1, 1], [], []>} : vector<32x36xbf16>, vector<36x256xbf16>, vector<32x256xf32> -> vector<32x256xf32>
    %c0_4 = arith.constant 0 : index
    %c0_5 = arith.constant 0 : index
    %4 = vector.load %arg3[%c0_4, %c0_5] : memref<32x1xf32, #tpu.memory_space<vmem>>, vector<32x1xf32>
    %5 = vector.broadcast %4 : vector<32x1xf32> to vector<32x256xf32>
    %6 = arith.addf %3, %5 : vector<32x256xf32>
    %cst_6 = arith.constant 0.000000e+00 : f32
    %7 = vector.broadcast %cst_6 : f32 to vector<32x256xf32>
    %8 = arith.cmpf ogt, %6, %7 : vector<32x256xf32>
    %cst_7 = arith.constant 0.00999999977 : f32
    %9 = vector.broadcast %cst_7 : f32 to vector<32x256xf32>
    %10 = arith.mulf %9, %6 : vector<32x256xf32>
    %11 = arith.select %8, %6, %10 : vector<32x256xi1>, vector<32x256xf32>
    %c0_8 = arith.constant 0 : index
    %c0_9 = arith.constant 0 : index
    %12 = vector.load %arg4[%c0_8, %c0_9] : memref<54x32xbf16, #tpu.memory_space<vmem>>, vector<54x32xbf16>
    %13 = arith.truncf %11 : vector<32x256xf32> to vector<32x256xbf16>
    %cst_10 = arith.constant dense<0.000000e+00> : vector<54x256xf32>
    %14 = tpu.matmul %12, %13, %cst_10 {dimension_numbers = #tpu.dot_dimension_numbers<[1], [0], [0], [1], [0, 0, 1, 1], [], []>} : vector<54x32xbf16>, vector<32x256xbf16>, vector<54x256xf32> -> vector<54x256xf32>
    %c0_11 = arith.constant 0 : index
    %c0_12 = arith.constant 0 : index
    %15 = vector.load %arg5[%c0_11, %c0_12] : memref<54x1xf32, #tpu.memory_space<vmem>>, vector<54x1xf32>
    %16 = vector.broadcast %15 : vector<54x1xf32> to vector<54x256xf32>
    %17 = arith.addf %14, %16 : vector<54x256xf32>
    %c0_13 = arith.constant 0 : index
    %c0_14 = arith.constant 0 : index
    %c0_15 = arith.constant 0 : index
    %18 = vector.load %arg6[%c0_13, %c0_14, %c0_15] : memref<1x54x256xf32, #tpu.memory_space<vmem>>, vector<1x54x256xf32>
    %19 = vector.shape_cast %18 : vector<1x54x256xf32> to vector<54x256xf32>
    %20 = vector.shape_cast %17 : vector<54x256xf32> to vector<1x54x256xf32>
    tpu.vector_store %arg6[%c0_13, %c0_14, %c0_15], %20 {strides = array<i32>} : memref<1x54x256xf32, #tpu.memory_space<vmem>>, vector<1x54x256xf32>,
    return
  }
  func.func @transform_0(%arg0: i32) -> (i32, i32, i32) {
    %c0_i32 = arith.constant 0 : i32
    %c0_i32_0 = arith.constant 0 : i32
    %c0_i32_1 = arith.constant 0 : i32
    return %arg0, %c0_i32, %c0_i32_0 : i32, i32, i32
  }
  func.func @transform_1(%arg0: i32) -> (i32, i32) {
    %c0_i32 = arith.constant 0 : i32
    %c0_i32_0 = arith.constant 0 : i32
    %c0_i32_1 = arith.constant 0 : i32
    return %c0_i32, %c0_i32_0 : i32, i32
  }
  func.func @transform_2(%arg0: i32) -> (i32, i32) {
    %c0_i32 = arith.constant 0 : i32
    %c0_i32_0 = arith.constant 0 : i32
    %c0_i32_1 = arith.constant 0 : i32
    return %c0_i32, %c0_i32_0 : i32, i32
  }
  func.func @transform_3(%arg0: i32) -> (i32, i32) {
    %c0_i32 = arith.constant 0 : i32
    %c0_i32_0 = arith.constant 0 : i32
    %c0_i32_1 = arith.constant 0 : i32
    return %c0_i32, %c0_i32_0 : i32, i32
  }
  func.func @transform_4(%arg0: i32) -> (i32, i32) {
    %c0_i32 = arith.constant 0 : i32
    %c0_i32_0 = arith.constant 0 : i32
    %c0_i32_1 = arith.constant 0 : i32
    return %c0_i32, %c0_i32_0 : i32, i32
  }
  func.func @transform_5(%arg0: i32) -> (i32, i32, i32) {
    %c0_i32 = arith.constant 0 : i32
    %c0_i32_0 = arith.constant 0 : i32
    %c0_i32_1 = arith.constant 0 : i32
    return %arg0, %c0_i32, %c0_i32_0 : i32, i32, i32
  }
}

</mosaic_0001>

<bundles_post_ra>
// kernel: tpu_custom_call.1
= control target key start
LH: loop header
LB: loop body
LE: loop exit
PB: predicated region body
PF: predicated region fallthrough
CT: control target
= control target key end

     0   :  { %s698_s18 = smov 0   ;;  %s794_s0 = inlined_call_operand.vmem [shape: bf16[2,36,256], index: 0, kind: input, shape index: {}]   ;;  %s795_s1 = inlined_call_operand.vmem [shape: bf16[32,36], index: 1, kind: input, shape index: {}]   ;;  %s796_s2 = inlined_call_operand.vmem [shape: f32[32,1], index: 2, kind: input, shape index: {}]   ;;  %s797_s3 = inlined_call_operand.vmem [shape: bf16[54,32], index: 3, kind: input, shape index: {}]   ;;  %s798_s4 = inlined_call_operand.vmem [shape: f32[54,1], index: 4, kind: input, shape index: {}]   ;;  %s799_s5 = inlined_call_operand.vmem [shape: f32[2,54,256], index: 5, kind: output, shape index: {}]  }
   0x1 LB: > { %s579_s19 = sadd.s32 4294967295, %s665_s18   ;;  %p583_p0 = scmp.ge.s32.totalorder %s665_s18, 1  ;;  %s665_s18 = sphi %s698_s18, %s15_s18  }
   0x2   : > { %p187_p1 = scmp.lt.s32.totalorder %s665_s18, 3 }
   0x4   : > { %p188_p2 = pnand %p583_p0, %p187_p1 }
   0x5   : > { %p215_p3 = scmp.lt.s32.totalorder (!%p188_p2), %s579_s19, 1 }
   0x6   : > { %191 = sbr.rel (%p188_p2) target bundleno = 385 (0x181), region = 40 }
   0xb   : > { %v237_v0 = vld [vmem:[%s796_s2 + $0x10] sm:$0xff]  ;;  %v667_v1 = vmov 0   ;;  %v235_v2 = vld [vmem:[%s796_s2] sm:$0xff]  ;;  %s801_s19 = smov (!%p215_p3, %s579_s19), 1  ;;  %v238_v4 = vld [vmem:[%s796_s2 + $0x18] sm:$0xff]  ;;  %vm301_vm0 = vcmask 1041408  }
   0xc   : > { %656 = vset.pattern.permute.xlu0 %v667_v1  ;;  %657 = vset.pattern.permute.xlu1 %v667_v1  ;;  %s645_s24 = smul.u32 40, %s801_s19  ;;  %v236_v7 = vld [vmem:[%s796_s2 + $0x8] sm:$0xff]  ;;  %v383_v22 = vld [vmem:[%s798_s4 + $0x10] sm:$0xff]  ;;  %v384_v23 = vld [vmem:[%s798_s4 + $0x18] sm:$0xff]  ;;  %vm294_vm1 = vcmask 293888   ;;  %vm441_vm10 = vcmask 261120  }
   0xd   : > { %251 = vperm.xlu0 %656, %v237_v0   ;;  %241 = vperm.xlu1 %657, %v235_v2   ;;  %v640_v26 = vld [vmem:[%s795_s1] sm:$0xff]  ;;  %v386_v27 = vld [vmem:[%s798_s4 + $0x28] sm:$0xff]  ;;  %v387_v28 = vld [vmem:[%s798_s4 + $0x30] sm:$0x3f]  ;;  %s646_s10 = smul.u32 112, %s801_s19 }
   0xe   : > { %658 = vset.pattern.permute.xlu2 %v667_v1  ;;  %s219_s27 = scalar_lea.vmem %s794_s0, %s645_s24  ;;  %v641_v29 = vld [vmem:[%s795_s1 + $0x8] sm:$0xff] }
   0xf   : > { %v230_v3 = vld [vmem:[%s219_s27 + $0x20] sm:$0x33]  ;;  %v604_v8 = vld [vmem:[%s219_s27 + $0x10] sm:$0xf]  ;;  %v639_v11 = vld [vmem:[%s219_s27 + $0x14] sm:$0xf0]  ;;  %s775_s13 = scalar_lea.vmem %s799_s5, %s646_s10 }
  0x10   : > { %v282_v5 = vunpack.c.l.b16 %v230_v3  ;;  %v283_v6 = vunpack.c.h.b16 %v230_v3  ;;  %v638_v12 = vld [vmem:[%s219_s27 + $0x14] sm:$0xf]  ;;  %v606_v13 = vld [vmem:[%s219_s27 + $0x18] sm:$0xf0]  ;;  %v605_v16 = vor.u32 %v639_v11, %v604_v8  ;;  %v596_v18 = vld [vmem:[%s219_s27] sm:$0xf] }
  0x11   : > { %v609_v17 = vor.u32 %v638_v12, %v606_v13  ;;  %v637_v19 = vld [vmem:[%s219_s27 + $0x4] sm:$0xf0]  ;;  %v636_v20 = vld [vmem:[%s219_s27 + $0x4] sm:$0xf]  ;;  %v598_v21 = vld [vmem:[%s219_s27 + $0x8] sm:$0xf0] }
  0x12   : > { %v288_v9 = vpack.c.b16 %v282_v5, %v282_v5  ;;  %v289_v10 = vpack.c.b16 %v283_v6, %v283_v6  ;;  %v597_v24 = vor.u32 %v637_v19, %v596_v18  ;;  %v601_v25 = vor.u32 %v636_v20, %v598_v21  ;;  %v642_v6 = vld [vmem:[%s797_s3] sm:$0xff]  ;;  %v643_v8 = vld [vmem:[%s797_s3 + $0x8] sm:$0xff]  ;;  %v644_v11 = vld [vmem:[%s797_s3 + $0x10] sm:$0xff] }
  0x13   : > { %v376_v12 = vld [vmem:[%s797_s3 + $0x18] sm:$0x7] }
  0x14   : > { %v303_v14 = vsel %vm301_vm0, %v288_v9, 0  ;;  %v306_v15 = vsel %vm301_vm0, %v289_v10, 0  ;;  %v382_v9 = vld [vmem:[%s798_s4 + $0x8] sm:$0xff]  ;;  %v385_v10 = vld [vmem:[%s798_s4 + $0x20] sm:$0xff]  ;;  %v436_v13 = vunpack.c.l.b16 %v376_v12 }
  0x15   : > { %256 = vperm.xlu0 %656, %v238_v4   ;;  %246 = vperm.xlu1 %657, %v236_v7   ;;  %v381_v7 = vld [vmem:[%s798_s4] sm:$0xff] }
  0x16   : > { %313 = vmatpush.bf16.msra.mxu0 %v303_v14  ;;  %332 = vmatpush.bf16.msra.mxu1 %v306_v15  ;;  %v440_v14 = vpack.c.b16 %v436_v13, %v436_v13 }
  0x17   : > { %390 = vperm.xlu2 %658, %v381_v7  }
  0x1a   : > { %314 = vmatpush.bf16.msra.mxu0 %v605_v16  ;;  %333 = vmatpush.bf16.msra.mxu1 %v609_v17 }
  0x1d   : > { %400 = vperm.xlu0 %656, %v383_v22   ;;  %405 = vperm.xlu1 %657, %v384_v23  }
  0x1e   : > { %315 = vmatpush.bf16.msra.mxu0 %v597_v24  ;;  %334 = vmatpush.bf16.msra.mxu1 %v601_v25 }
  0x1f   : > { %395 = vperm.xlu2 %658, %v382_v9  }
  0x21   : > { %610 = vmatmul.msk.bf16.vlgmr.msra.gmra.mxu0 %vm294_vm1, %v640_v26  ;;  %612 = vmatmul.msk.bf16.vlgmr.msra.gmra.mxu1 %vm294_vm1, %v640_v26 }
  0x25   : > { %415 = vperm.xlu0 %656, %v386_v27   ;;  %420 = vperm.xlu1 %657, %v387_v28  }
  0x27   : > { %410 = vperm.xlu2 %658, %v385_v10  }
  0x31   : > { %611 = vmatmul.msk.bf16.gmra.mxu0 %vm294_vm1, %v641_v29  ;;  %613 = vmatmul.msk.bf16.gmra.mxu1 %vm294_vm1, %v641_v29 }
  0x71   : > { %v391_v15 = vpop.permute.xlu2 %390 }
  0x79   : > { %v396_v20 = vpop.permute.xlu2 %395 }
  0x7f   : > { %v242_v34 = vpop.permute.xlu1 %241  ;;  %v252_v35 = vpop.permute.xlu0 %251 }
  0x87   : > { %v247_v38 = vpop.permute.xlu1 %246  ;;  %v257_v43 = vpop.permute.xlu0 %256 }
  0x8f   : > { %v401_v25 = vpop.permute.xlu0 %400 }
  0x9e   : > { %v317_v30 = vpop.f32.mrf.mxu0  ;;  %v336_v31 = vpop.f32.mrf.mxu1 }
  0x9f   : > { %v318_v44 = vadd.f32 %v317_v30, %v242_v34  ;;  %v337_v45 = vadd.f32 %v336_v31, %v242_v34  ;;  %v406_v30 = vpop.permute.xlu1 %405 }
  0xa1   : > { %v354_v56 = vmul.f32 0.01, %v318_v44  ;;  %v355_v57 = vmul.f32 0.01, %v337_v45  ;;  %vm346_vm8 = vcmp.gt.f32.partialorder %v318_v44, 0.0  ;;  %vm347_vm9 = vcmp.gt.f32.partialorder %v337_v45, 0.0 }
  0xa3   : > { %v362_v2 = vsel %vm346_vm8, %v318_v44, %v354_v56  ;;  %v363_v3 = vsel %vm347_vm9, %v337_v45, %v355_v57 }
  0xa6   : > { %v319_v32 = vpop.f32.mrf.mxu0  ;;  %v338_v33 = vpop.f32.mrf.mxu1 }
  0xa7   : > { %v320_v41 = vadd.f32 %v319_v32, %v247_v38  ;;  %v339_v42 = vadd.f32 %v338_v33, %v247_v38  ;;  %v421_v45 = vpop.permute.xlu1 %420 }
  0xa9   : > { %v356_v52 = vmul.f32 0.01, %v320_v41  ;;  %v357_v53 = vmul.f32 0.01, %v339_v42  ;;  %vm348_vm6 = vcmp.gt.f32.partialorder %v320_v41, 0.0  ;;  %vm349_vm7 = vcmp.gt.f32.partialorder %v339_v42, 0.0 }
  0xab   : > { %v364_v0 = vsel %vm348_vm6, %v320_v41, %v356_v52  ;;  %v365_v1 = vsel %vm349_vm7, %v339_v42, %v357_v53 }
  0xac   : > { %v377_v4 = vpack.c.bf16 %v364_v0, %v362_v2  ;;  %v378_v5 = vpack.c.bf16 %v365_v1, %v363_v3 }
  0xae   : > { %v322_v36 = vpop.f32.mrf.mxu0  ;;  %v341_v37 = vpop.f32.mrf.mxu1 }
  0xaf   : > { %v323_v39 = vadd.f32 %v322_v36, %v252_v35  ;;  %v342_v40 = vadd.f32 %v341_v37, %v252_v35  ;;  %v411_v35 = vpop.permute.xlu2 %410 }
  0xb1   : > { %v358_v48 = vmul.f32 0.01, %v323_v39  ;;  %v359_v49 = vmul.f32 0.01, %v342_v40  ;;  %vm350_vm2 = vcmp.gt.f32.partialorder %v323_v39, 0.0  ;;  %vm351_vm3 = vcmp.gt.f32.partialorder %v342_v40, 0.0 }
  0xb3   : > { %v366_v58 = vsel %vm350_vm2, %v323_v39, %v358_v48  ;;  %v367_v60 = vsel %vm351_vm3, %v342_v40, %v359_v49  ;;  %v416_v40 = vpop.permute.xlu0 %415 }
  0xb6   : > { %v324_v46 = vpop.f32.mrf.mxu0  ;;  %v343_v47 = vpop.f32.mrf.mxu1 }
  0xb7   : > { %v325_v50 = vadd.f32 %v324_v46, %v257_v43  ;;  %v344_v51 = vadd.f32 %v343_v47, %v257_v43 }
  0xb9   : > { %v360_v54 = vmul.f32 0.01, %v325_v50  ;;  %v361_v55 = vmul.f32 0.01, %v344_v51  ;;  %vm352_vm4 = vcmp.gt.f32.partialorder %v325_v50, 0.0  ;;  %vm353_vm5 = vcmp.gt.f32.partialorder %v344_v51, 0.0 }
  0xbb   : > { %v368_v59 = vsel %vm352_vm4, %v325_v50, %v360_v54  ;;  %v369_v61 = vsel %vm353_vm5, %v344_v51, %v361_v55 }
  0xbc   : > { %v379_v62 = vpack.c.bf16 %v368_v59, %v366_v58  ;;  %v380_v63 = vpack.c.bf16 %v369_v61, %v367_v60 }
  0xbe   : > { %460 = vmatpush.bf16.msra.mxu2 %v379_v62  ;;  %488 = vmatpush.bf16.msra.mxu3 %v380_v63 }
  0xc2   : > { %461 = vmatpush.bf16.msra.mxu2 %v377_v4  ;;  %489 = vmatpush.bf16.msra.mxu3 %v378_v5 }
  0xc5   : > { %626 = vmatmul.msk.bf16.vlgmr.msra.gmra.mxu2 %vm441_vm10, %v642_v6  ;;  %630 = vmatmul.msk.bf16.vlgmr.msra.gmra.mxu3 %vm441_vm10, %v642_v6 }
  0xd5   : > { %627 = vmatmul.msk.bf16.gmra.mxu2 %vm441_vm10, %v643_v8  ;;  %631 = vmatmul.msk.bf16.gmra.mxu3 %vm441_vm10, %v643_v8 }
  0xe5   : > { %628 = vmatmul.msk.bf16.gmra.mxu2 %vm441_vm10, %v644_v11  ;;  %632 = vmatmul.msk.bf16.gmra.mxu3 %vm441_vm10, %v644_v11 }
  0xf5   : > { %629 = vmatmul.msk.bf16.gmra.mxu2 %vm441_vm10, %v440_v14  ;;  %633 = vmatmul.msk.bf16.gmra.mxu3 %vm441_vm10, %v440_v14 }
 0x148   : > { %v463_v16 = vpop.f32.mrf.mxu2  ;;  %v491_v17 = vpop.f32.mrf.mxu3 }
 0x149   : > { %v464_v18 = vadd.f32 %v463_v16, %v391_v15  ;;  %v492_v19 = vadd.f32 %v491_v17, %v391_v15 }
 0x14b   : > { %510 = vst [vmem:[%s775_s13] sm:$0xff] %v464_v18 }
 0x14c   : > { %511 = vst [vmem:[%s775_s13 + $0x8] sm:$0xff] %v492_v19 }
 0x150   : > { %v465_v21 = vpop.f32.mrf.mxu2  ;;  %v493_v22 = vpop.f32.mrf.mxu3 }
 0x151   : > { %v466_v23 = vadd.f32 %v465_v21, %v396_v20  ;;  %v494_v24 = vadd.f32 %v493_v22, %v396_v20 }
 0x153   : > { %512 = vst [vmem:[%s775_s13 + $0x10] sm:$0xff] %v466_v23 }
 0x154   : > { %513 = vst [vmem:[%s775_s13 + $0x18] sm:$0xff] %v494_v24 }
 0x158   : > { %v468_v26 = vpop.f32.mrf.mxu2  ;;  %v496_v27 = vpop.f32.mrf.mxu3 }
 0x159   : > { %v469_v28 = vadd.f32 %v468_v26, %v401_v25  ;;  %v497_v29 = vadd.f32 %v496_v27, %v401_v25 }
 0x15b   : > { %514 = vst [vmem:[%s775_s13 + $0x20] sm:$0xff] %v469_v28 }
 0x15c   : > { %515 = vst [vmem:[%s775_s13 + $0x28] sm:$0xff] %v497_v29 }
 0x160   : > { %v470_v31 = vpop.f32.mrf.mxu2  ;;  %v498_v32 = vpop.f32.mrf.mxu3 }
 0x161   : > { %v471_v33 = vadd.f32 %v470_v31, %v406_v30  ;;  %v499_v34 = vadd.f32 %v498_v32, %v406_v30 }
 0x163   : > { %516 = vst [vmem:[%s775_s13 + $0x30] sm:$0xff] %v471_v33 }
 0x164   : > { %517 = vst [vmem:[%s775_s13 + $0x38] sm:$0xff] %v499_v34 }
 0x168   : > { %v473_v36 = vpop.f32.mrf.mxu2  ;;  %v501_v37 = vpop.f32.mrf.mxu3 }
 0x169   : > { %v474_v38 = vadd.f32 %v473_v36, %v411_v35  ;;  %v502_v39 = vadd.f32 %v501_v37, %v411_v35 }
 0x16b   : > { %518 = vst [vmem:[%s775_s13 + $0x40] sm:$0xff] %v474_v38 }
 0x16c   : > { %519 = vst [vmem:[%s775_s13 + $0x48] sm:$0xff] %v502_v39 }
 0x170   : > { %v475_v41 = vpop.f32.mrf.mxu2  ;;  %v503_v42 = vpop.f32.mrf.mxu3 }
 0x171   : > { %v476_v43 = vadd.f32 %v475_v41, %v416_v40  ;;  %v504_v44 = vadd.f32 %v503_v42, %v416_v40 }
 0x173   : > { %520 = vst [vmem:[%s775_s13 + $0x50] sm:$0xff] %v476_v43 }
 0x174   : > { %521 = vst [vmem:[%s775_s13 + $0x58] sm:$0xff] %v504_v44 }
 0x178   : > { %v478_v46 = vpop.f32.mrf.mxu2  ;;  %v506_v47 = vpop.f32.mrf.mxu3 }
 0x179   : > { %v479_v48 = vadd.f32 %v478_v46, %v421_v45  ;;  %v507_v49 = vadd.f32 %v506_v47, %v421_v45 }
 0x17b   : > { %522 = vst [vmem:[%s775_s13 + $0x60] sm:$0x3f] %v479_v48 }
 0x17c   : > { %523 = vst [vmem:[%s775_s13 + $0x68] sm:$0x3f] %v507_v49 }
 0x180   : > { %v480_v50 = vpop.f32.mrf.mxu2  ;;  %v508_v51 = vpop.f32.mrf.mxu3 }
 0x181 PF: > { %s15_s18 = sadd.s32 1, %s665_s18  }
 0x182   : > { %p12_p4 = scmp.ge.s32.totalorder %s15_s18, 4  }
 0x184   :  { %14 = sbr.rel (!%p12_p4) target bundleno = 1 (0x1), region = 70 }

</bundles_post_ra>
